<compile_context>
chip_gen: v5e
topology: v5e:2x2
jax: 0.10.0
libtpu: 0.0.40
codegen_flags: <defaults>
</compile_context>

<pallas_src>
import functools

import jax
import jax.numpy as jnp
from jax.experimental import pallas as pl
from jax.experimental.pallas import tpu as pltpu

EPS = 1e-5


def _batch_tile(batch):
    """Largest preferred batch tile that divides `batch` (sublane-aligned)."""
    for t in (4096, 2048, 1024, 512, 256, 128, 64, 32, 16, 8):
        if batch % t == 0:
            return t
    return batch  # small / odd batch: single whole-batch tile


def _vmem_limit_bytes():
    """Per-generation scoped-VMEM budget with headroom (v7x: 64 MiB physical,
    v5e/v6e: 128 MiB).  Actual usage here is only a few MiB."""
    try:
        cap = pltpu.get_tpu_info().vmem_capacity_bytes
    except Exception:  # info query unavailable -> conservative default
        cap = 64 * 1024 * 1024
    return int(cap * 3 // 4)


def _fusion_kernel(x_ref, y_ref, w1x_ref, w1y_ref, b12_ref, w2_ref, w3_ref,
                   bgb_ref, o_ref, *, tb, inv_batch):
    """One batch tile: Linear+ReLU, Linear+ReLU, Linear -> resident z block.
    Last grid step: BatchNorm1d (global batch stats) + Tanh, in place."""
    i = pl.program_id(0)

    b1 = b12_ref[0:1, :]
    b2 = b12_ref[1:2, :]
    b3 = bgb_ref[0:1, :]
    gamma = bgb_ref[1:2, :]
    beta = bgb_ref[2:3, :]

    # Linear(2F -> F) without materializing concat([x, y], -1):
    #   [x | y] @ [[w1x], [w1y]] == x @ w1x + y @ w1y
    h1 = (jnp.dot(x_ref[...], w1x_ref[...], preferred_element_type=jnp.float32)
          + jnp.dot(y_ref[...], w1y_ref[...], preferred_element_type=jnp.float32)
          + b1)
    h1 = jnp.maximum(h1, 0.0)

    # Linear(F -> F) + ReLU
    h2 = jnp.dot(h1, w2_ref[...], preferred_element_type=jnp.float32) + b2
    h2 = jnp.maximum(h2, 0.0)

    # Linear(F -> nbit) -> write into the VMEM-resident (B, nbit) output block.
    z = jnp.dot(h2, w3_ref[...], preferred_element_type=jnp.float32) + b3
    row0 = pl.multiple_of(i * tb, tb)
    o_ref[pl.ds(row0, tb), :] = z

    # Finalize on the last grid step: the whole pre-BN activation is resident,
    # so compute global batch stats (two-pass, matches the reference), hoist
    # the affine into (scale, shift), and apply tanh in place.  Only the final
    # normalized output is ever written back to HBM.
    @pl.when(i == pl.num_programs(0) - 1)
    def _():
        z_all = o_ref[...]
        mean = jnp.sum(z_all, axis=0, keepdims=True) * inv_batch
        d = z_all - mean
        var = jnp.sum(d * d, axis=0, keepdims=True) * inv_batch  # biased var
        scale = gamma * jax.lax.rsqrt(var + EPS)
        shift = beta - mean * scale
        o_ref[...] = jnp.tanh(z_all * scale + shift)


def fusion_forward(x, y, params):
    """x, y: [B, fusion_dim] float32. Returns [B, nbit] float32."""
    w1x, w1y, b12, w2, w3, bgb = params
    B, F = x.shape
    nbit = w3.shape[1]

    tb = _batch_tile(B)
    grid = (B // tb,)

    def const_spec(shape):
        # Weights / packed params / output: constant block index -> VMEM-resident.
        return pl.BlockSpec(shape, lambda i: (0, 0))

    def batch_spec(cols):
        return pl.BlockSpec((tb, cols), lambda i: (i, 0))

    out = pl.pallas_call(
        functools.partial(_fusion_kernel, tb=tb, inv_batch=1.0 / B),
        grid=grid,
        in_specs=[
            batch_spec(F), batch_spec(F),          # x, y tiles (pipelined)
            const_spec((F, F)), const_spec((F, F)),  # w1x, w1y
            const_spec((2, F)),                      # [b1; b2]
            const_spec((F, F)),                      # w2
            const_spec((F, nbit)),                   # w3
            const_spec((3, nbit)),                   # [b3; gamma; beta]
        ],
        # Output is resident across the whole batch grid (accumulator-style);
        # BN + tanh are applied in place on the last step, then one HBM write.
        out_specs=const_spec((B, nbit)),
        out_shape=jax.ShapeDtypeStruct((B, nbit), jnp.float32),
        compiler_params=pltpu.CompilerParams(
            dimension_semantics=("arbitrary",),
            vmem_limit_bytes=_vmem_limit_bytes(),
        ),
    )(x, y, w1x, w1y, b12, w2, w3, bgb)
    return out


def init_params(key, fusion_dim, nbit):
    """Deterministic init. Linear weights stored transposed ([in, out]); the
    first layer's weight is pre-split into the x-half and y-half, and the tiny
    row-vector params are packed to minimize per-call DMAs."""
    ks = jax.random.split(key, 6)

    def linear(kw, kb, fan_in, fan_out):
        bound = 1.0 / jnp.sqrt(fan_in)
        w = jax.random.uniform(kw, (fan_in, fan_out), jnp.float32, -bound, bound)
        b = jax.random.uniform(kb, (1, fan_out), jnp.float32, -bound, bound)
        return w, b

    w1, b1 = linear(ks[0], ks[1], 2 * fusion_dim, fusion_dim)
    w2, b2 = linear(ks[2], ks[3], fusion_dim, fusion_dim)
    w3, b3 = linear(ks[4], ks[5], fusion_dim, nbit)

    w1x, w1y = w1[:fusion_dim], w1[fusion_dim:]        # split of the 2F Linear
    b12 = jnp.concatenate([b1, b2], axis=0)            # (2, F)
    gamma = jnp.ones((1, nbit), jnp.float32)           # BatchNorm1d weight
    beta = jnp.zeros((1, nbit), jnp.float32)           # BatchNorm1d bias
    bgb = jnp.concatenate([b3, gamma, beta], axis=0)   # (3, nbit)
    return (w1x, w1y, b12, w2, w3, bgb)


def fusion_ref(x, y, params):
    """Pure-JAX reference (mirrors the PyTorch module, training-mode BN)."""
    w1x, w1y, b12, w2, w3, bgb = params
    b1, b2 = b12[0:1], b12[1:2]
    b3, gamma, beta = bgb[0:1], bgb[1:2], bgb[2:3]
    xy = jnp.concatenate([x, y], axis=-1)
    w1 = jnp.concatenate([w1x, w1y], axis=0)
    h1 = jnp.maximum(xy @ w1 + b1, 0.0)
    h2 = jnp.maximum(h1 @ w2 + b2, 0.0)
    z = h2 @ w3 + b3
    mean = jnp.mean(z, axis=0, keepdims=True)
    var = jnp.mean((z - mean) ** 2, axis=0, keepdims=True)
    return jnp.tanh((z - mean) / jnp.sqrt(var + EPS) * gamma + beta)


if __name__ == "__main__":
    key = jax.random.PRNGKey(0)

    def run_case(batch, fusion_dim, nbit, case_key):
        kx, ky, kp = jax.random.split(case_key, 3)
        x = jax.random.normal(kx, (batch, fusion_dim), jnp.float32)
        y = jax.random.normal(ky, (batch, fusion_dim), jnp.float32)
        params = init_params(kp, fusion_dim, nbit)

        out = jax.block_until_ready(fusion_forward(x, y, params))
        ref = fusion_ref(x, y, params)
        assert out.shape == (batch, nbit)
        err = float(jnp.max(jnp.abs(out - ref)))
        assert jnp.allclose(out, ref, atol=5e-5, rtol=5e-5), (
            f"mismatch vs reference (batch={batch}, max abs err={err})")

    keys = jax.random.split(key, 3)
    # Spec-sized tiny case: single batch tile, grid=(1,).
    run_case(8, 32, 16, keys[0])
    # Multi-tile case (3 tiles of 8): exercises the resident-output finalize
    # path with cross-tile BatchNorm statistics at tiny cost.
    run_case(24, 32, 16, keys[1])
    # Large case: 2 tiles of 4096 rows -> large, efficient DMAs and the
    # pipelined batch grid.
    run_case(8192, 32, 16, keys[2])

    print("KERNEL_OK")
</pallas_src>

<mosaic_0001>
module attributes {stable_mosaic.version = 11 : i64} {
  func.func @_fusion_kernel(%arg0: i32, %arg1: memref<8x32xf32, #tpu.memory_space<vmem>>, %arg2: memref<8x32xf32, #tpu.memory_space<vmem>>, %arg3: memref<32x32xf32, #tpu.memory_space<vmem>>, %arg4: memref<32x32xf32, #tpu.memory_space<vmem>>, %arg5: memref<2x32xf32, #tpu.memory_space<vmem>>, %arg6: memref<32x32xf32, #tpu.memory_space<vmem>>, %arg7: memref<32x16xf32, #tpu.memory_space<vmem>>, %arg8: memref<3x16xf32, #tpu.memory_space<vmem>>, %arg9: memref<8x16xf32, #tpu.memory_space<vmem>>) attributes {dimension_semantics = [#tpu.dimension_semantics<arbitrary>], iteration_bounds = array<i64: 1>, scalar_prefetch = 0 : i64, scratch_operands = 0 : i64, tpu.core_type = #tpu.core_type<tc>, window_params = [{transform_indices = @transform_0, window_bounds = array<i64: 8, 32>}, {transform_indices = @transform_1, window_bounds = array<i64: 8, 32>}, {pipeline_mode = #tpu.pipeline_mode<synchronous>, transform_indices = @transform_2, window_bounds = array<i64: 32, 32>}, {pipeline_mode = #tpu.pipeline_mode<synchronous>, transform_indices = @transform_3, window_bounds = array<i64: 32, 32>}, {pipeline_mode = #tpu.pipeline_mode<synchronous>, transform_indices = @transform_4, window_bounds = array<i64: 2, 32>}, {pipeline_mode = #tpu.pipeline_mode<synchronous>, transform_indices = @transform_5, window_bounds = array<i64: 32, 32>}, {pipeline_mode = #tpu.pipeline_mode<synchronous>, transform_indices = @transform_6, window_bounds = array<i64: 32, 16>}, {pipeline_mode = #tpu.pipeline_mode<synchronous>, transform_indices = @transform_7, window_bounds = array<i64: 3, 16>}, {pipeline_mode = #tpu.pipeline_mode<synchronous>, transform_indices = @transform_8, window_bounds = array<i64: 8, 16>}]} {
    %c0 = arith.constant 0 : index
    %c0_0 = arith.constant 0 : index
    %0 = vector.load %arg5[%c0, %c0_0] : memref<2x32xf32, #tpu.memory_space<vmem>>, vector<1x32xf32>
    %c1 = arith.constant 1 : index
    %c0_1 = arith.constant 0 : index
    %1 = vector.load %arg5[%c1, %c0_1] : memref<2x32xf32, #tpu.memory_space<vmem>>, vector<1x32xf32>
    %c0_2 = arith.constant 0 : index
    %c0_3 = arith.constant 0 : index
    %2 = vector.load %arg8[%c0_2, %c0_3] : memref<3x16xf32, #tpu.memory_space<vmem>>, vector<1x16xf32>
    %c1_4 = arith.constant 1 : index
    %c0_5 = arith.constant 0 : index
    %3 = vector.load %arg8[%c1_4, %c0_5] : memref<3x16xf32, #tpu.memory_space<vmem>>, vector<1x16xf32>
    %c2 = arith.constant 2 : index
    %c0_6 = arith.constant 0 : index
    %4 = vector.load %arg8[%c2, %c0_6] : memref<3x16xf32, #tpu.memory_space<vmem>>, vector<1x16xf32>
    %c0_7 = arith.constant 0 : index
    %c0_8 = arith.constant 0 : index
    %5 = vector.load %arg1[%c0_7, %c0_8] : memref<8x32xf32, #tpu.memory_space<vmem>>, vector<8x32xf32>
    %c0_9 = arith.constant 0 : index
    %c0_10 = arith.constant 0 : index
    %6 = vector.load %arg3[%c0_9, %c0_10] : memref<32x32xf32, #tpu.memory_space<vmem>>, vector<32x32xf32>
    %cst = arith.constant dense<0.000000e+00> : vector<8x32xf32>
    %7 = tpu.matmul %5, %6, %cst {dimension_numbers = #tpu.dot_dimension_numbers<[1], [0], [0], [1], [0, 0, 1, 1], [], []>} : vector<8x32xf32>, vector<32x32xf32>, vector<8x32xf32> -> vector<8x32xf32>
    %c0_11 = arith.constant 0 : index
    %c0_12 = arith.constant 0 : index
    %8 = vector.load %arg2[%c0_11, %c0_12] : memref<8x32xf32, #tpu.memory_space<vmem>>, vector<8x32xf32>
    %c0_13 = arith.constant 0 : index
    %c0_14 = arith.constant 0 : index
    %9 = vector.load %arg4[%c0_13, %c0_14] : memref<32x32xf32, #tpu.memory_space<vmem>>, vector<32x32xf32>
    %cst_15 = arith.constant dense<0.000000e+00> : vector<8x32xf32>
    %10 = tpu.matmul %8, %9, %cst_15 {dimension_numbers = #tpu.dot_dimension_numbers<[1], [0], [0], [1], [0, 0, 1, 1], [], []>} : vector<8x32xf32>, vector<32x32xf32>, vector<8x32xf32> -> vector<8x32xf32>
    %11 = arith.addf %7, %10 : vector<8x32xf32>
    %12 = vector.broadcast %0 : vector<1x32xf32> to vector<8x32xf32>
    %13 = arith.addf %11, %12 : vector<8x32xf32>
    %cst_16 = arith.constant 0.000000e+00 : f32
    %14 = vector.broadcast %cst_16 : f32 to vector<8x32xf32>
    %15 = arith.maximumf %13, %14 : vector<8x32xf32>
    %c0_17 = arith.constant 0 : index
    %c0_18 = arith.constant 0 : index
    %16 = vector.load %arg6[%c0_17, %c0_18] : memref<32x32xf32, #tpu.memory_space<vmem>>, vector<32x32xf32>
    %cst_19 = arith.constant dense<0.000000e+00> : vector<8x32xf32>
    %17 = tpu.matmul %15, %16, %cst_19 {dimension_numbers = #tpu.dot_dimension_numbers<[1], [0], [0], [1], [0, 0, 1, 1], [], []>} : vector<8x32xf32>, vector<32x32xf32>, vector<8x32xf32> -> vector<8x32xf32>
    %18 = vector.broadcast %1 : vector<1x32xf32> to vector<8x32xf32>
    %19 = arith.addf %17, %18 : vector<8x32xf32>
    %cst_20 = arith.constant 0.000000e+00 : f32
    %20 = vector.broadcast %cst_20 : f32 to vector<8x32xf32>
    %21 = arith.maximumf %19, %20 : vector<8x32xf32>
    %c0_21 = arith.constant 0 : index
    %c0_22 = arith.constant 0 : index
    %22 = vector.load %arg7[%c0_21, %c0_22] : memref<32x16xf32, #tpu.memory_space<vmem>>, vector<32x16xf32>
    %cst_23 = arith.constant dense<0.000000e+00> : vector<8x16xf32>
    %23 = tpu.matmul %21, %22, %cst_23 {dimension_numbers = #tpu.dot_dimension_numbers<[1], [0], [0], [1], [0, 0, 1, 1], [], []>} : vector<8x32xf32>, vector<32x16xf32>, vector<8x16xf32> -> vector<8x16xf32>
    %24 = vector.broadcast %2 : vector<1x16xf32> to vector<8x16xf32>
    %25 = arith.addf %23, %24 : vector<8x16xf32>
    %c8_i32 = arith.constant 8 : i32
    %26 = arith.muli %arg0, %c8_i32 : i32
    %27 = tpu.assume_multiple %26, 8 : i32
    %28 = arith.index_cast %27 : i32 to index
    %c0_24 = arith.constant 0 : index
    %29 = vector.load %arg9[%28, %c0_24] : memref<8x16xf32, #tpu.memory_space<vmem>>, vector<8x16xf32>
    tpu.vector_store %arg9[%28, %c0_24], %25 {strides = array<i32>} : memref<8x16xf32, #tpu.memory_space<vmem>>, vector<8x16xf32>,
    %c0_i32 = arith.constant 0 : i32
    %30 = arith.cmpi eq, %arg0, %c0_i32 : i32
    %31 = arith.extui %30 : i1 to i32
    %c0_i32_25 = arith.constant 0 : i32
    %32 = arith.cmpi ne, %31, %c0_i32_25 : i32
    scf.if %32 {
      %c0_26 = arith.constant 0 : index
      %c0_27 = arith.constant 0 : index
      %33 = vector.load %arg9[%c0_26, %c0_27] : memref<8x16xf32, #tpu.memory_space<vmem>>, vector<8x16xf32>
      %cst_28 = arith.constant dense<0.000000e+00> : vector<16xf32>
      %34 = vector.multi_reduction <add>, %33, %cst_28 [0] : vector<8x16xf32> to vector<16xf32>
      %35 = vector.shape_cast %34 : vector<16xf32> to vector<1x16xf32>
      %cst_29 = arith.constant 1.250000e-01 : f32
      %36 = vector.broadcast %cst_29 : f32 to vector<1x16xf32>
      %37 = arith.mulf %35, %36 : vector<1x16xf32>
      %38 = vector.broadcast %37 : vector<1x16xf32> to vector<8x16xf32>
      %39 = arith.subf %33, %38 : vector<8x16xf32>
      %40 = arith.mulf %39, %39 : vector<8x16xf32>
      %cst_30 = arith.constant dense<0.000000e+00> : vector<16xf32>
      %41 = vector.multi_reduction <add>, %40, %cst_30 [0] : vector<8x16xf32> to vector<16xf32>
      %42 = vector.shape_cast %41 : vector<16xf32> to vector<1x16xf32>
      %cst_31 = arith.constant 1.250000e-01 : f32
      %43 = vector.broadcast %cst_31 : f32 to vector<1x16xf32>
      %44 = arith.mulf %42, %43 : vector<1x16xf32>
      %cst_32 = arith.constant 9.99999974E-6 : f32
      %45 = vector.broadcast %cst_32 : f32 to vector<1x16xf32>
      %46 = arith.addf %44, %45 : vector<1x16xf32>
      %47 = math.rsqrt %46 : vector<1x16xf32>
      %48 = arith.mulf %3, %47 : vector<1x16xf32>
      %49 = arith.mulf %37, %48 : vector<1x16xf32>
      %50 = arith.subf %4, %49 : vector<1x16xf32>
      %51 = vector.broadcast %48 : vector<1x16xf32> to vector<8x16xf32>
      %52 = arith.mulf %33, %51 : vector<8x16xf32>
      %53 = vector.broadcast %50 : vector<1x16xf32> to vector<8x16xf32>
      %54 = arith.addf %52, %53 : vector<8x16xf32>
      %55 = math.tanh %54 : vector<8x16xf32>
      %c0_33 = arith.constant 0 : index
      %c0_34 = arith.constant 0 : index
      %56 = vector.load %arg9[%c0_33, %c0_34] : memref<8x16xf32, #tpu.memory_space<vmem>>, vector<8x16xf32>
      tpu.vector_store %arg9[%c0_33, %c0_34], %55 {strides = array<i32>} : memref<8x16xf32, #tpu.memory_space<vmem>>, vector<8x16xf32>,
    } else {
    }
    return
  }
  func.func @transform_0(%arg0: i32) -> (i32, i32) {
    %c0_i32 = arith.constant 0 : i32
    %c0_i32_0 = arith.constant 0 : i32
    return %arg0, %c0_i32 : i32, i32
  }
  func.func @transform_1(%arg0: i32) -> (i32, i32) {
    %c0_i32 = arith.constant 0 : i32
    %c0_i32_0 = arith.constant 0 : i32
    return %arg0, %c0_i32 : i32, i32
  }
  func.func @transform_2(%arg0: i32) -> (i32, i32) {
    %c0_i32 = arith.constant 0 : i32
    %c0_i32_0 = arith.constant 0 : i32
    %c0_i32_1 = arith.constant 0 : i32
    return %c0_i32, %c0_i32_0 : i32, i32
  }
  func.func @transform_3(%arg0: i32) -> (i32, i32) {
    %c0_i32 = arith.constant 0 : i32
    %c0_i32_0 = arith.constant 0 : i32
    %c0_i32_1 = arith.constant 0 : i32
    return %c0_i32, %c0_i32_0 : i32, i32
  }
  func.func @transform_4(%arg0: i32) -> (i32, i32) {
    %c0_i32 = arith.constant 0 : i32
    %c0_i32_0 = arith.constant 0 : i32
    %c0_i32_1 = arith.constant 0 : i32
    return %c0_i32, %c0_i32_0 : i32, i32
  }
  func.func @transform_5(%arg0: i32) -> (i32, i32) {
    %c0_i32 = arith.constant 0 : i32
    %c0_i32_0 = arith.constant 0 : i32
    %c0_i32_1 = arith.constant 0 : i32
    return %c0_i32, %c0_i32_0 : i32, i32
  }
  func.func @transform_6(%arg0: i32) -> (i32, i32) {
    %c0_i32 = arith.constant 0 : i32
    %c0_i32_0 = arith.constant 0 : i32
    %c0_i32_1 = arith.constant 0 : i32
    return %c0_i32, %c0_i32_0 : i32, i32
  }
  func.func @transform_7(%arg0: i32) -> (i32, i32) {
    %c0_i32 = arith.constant 0 : i32
    %c0_i32_0 = arith.constant 0 : i32
    %c0_i32_1 = arith.constant 0 : i32
    return %c0_i32, %c0_i32_0 : i32, i32
  }
  func.func @transform_8(%arg0: i32) -> (i32, i32) {
    %c0_i32 = arith.constant 0 : i32
    %c0_i32_0 = arith.constant 0 : i32
    %c0_i32_1 = arith.constant 0 : i32
    return %c0_i32, %c0_i32_0 : i32, i32
  }
}

</mosaic_0001>

<bundles_post_ra>
// kernel: tpu_custom_call.1
= control target key start
LH: loop header
LB: loop body
LE: loop exit
PB: predicated region body
PF: predicated region fallthrough
CT: control target
= control target key end

     0   :  { %13 = vsyncpa [#allocation3], 0  ;;  %s491_s0 = inlined_call_operand.vmem [shape: f32[8,32], index: 0, kind: input, shape index: {}]   ;;  %s492_s1 = inlined_call_operand.vmem [shape: f32[8,32], index: 1, kind: input, shape index: {}]   ;;  %s493_s2 = inlined_call_operand.vmem [shape: f32[32,32], index: 2, kind: input, shape index: {}]   ;;  %s494_s3 = inlined_call_operand.hbm [shape: f32[32,32], index: 3, kind: input, shape index: {}]   ;;  %s495_s4 = inlined_call_operand.hbm [shape: f32[2,32], index: 4, kind: input, shape index: {}]   ;;  %s496_s5 = inlined_call_operand.hbm [shape: f32[32,32], index: 5, kind: input, shape index: {}]   ;;  %s497_s6 = inlined_call_operand.vmem [shape: f32[32,16], index: 6, kind: input, shape index: {}]   ;;  %s498_s7 = inlined_call_operand.vmem [shape: f32[3,16], index: 7, kind: input, shape index: {}]   ;;  %s499_s8 = inlined_call_operand.hbm [shape: f32[8,16], index: 8, kind: output, shape index: {}]  }
   0x1   :  { %14 = vsyncpa [#allocation6], 0  ;;  %s40_s29 = sshll.u32 %s495_s4, 4  ;;  %s41_s29 = int_to_ptr.hbm [resolvable:$true] %s40_s29 }
   0x2   :  { %15 = vsyncpa [#allocation4], 0  ;;  %s381_s30 = smov [#allocation5]   ;;  %s26_s12 = sshll.u32 %s494_s3, 4  ;;  %s27_s12 = int_to_ptr.hbm [resolvable:$true] %s26_s12 }
   0x3   :  { %s42_s9 = sshll.u32 %s381_s30, 4  ;;  %s382_s13 = smov [#allocation2]   ;;  %s43_s9 = int_to_ptr.vmem [resolvable:$true] %s42_s9 }
   0x4   :  { %45 = dma.hbm_to_vmem [thread:$0]  %s41_s29, 32, %s43_s9, [#allocation6]  }
   0x5   :  { %s28_s14 = sshll.u32 %s382_s13, 4  ;;  %s383_s15 = smov 128   ;;  %s29_s14 = int_to_ptr.vmem [resolvable:$true] %s28_s14 }
   0x6   :  { %s384_s16 = smov 8   ;;  %s50_s4 = sshll.u32 %s496_s5, 4  ;;  %s51_s4 = int_to_ptr.hbm [resolvable:$true] %s50_s4 }
   0x7   :  { %34 = dma.hbm_to_vmem [thread:$0]  %s27_s12, 512, %s29_s14, [#allocation3], %s383_s15, %s383_s15, %s384_s16  }
   0x8   :  { %s385_s19 = smov [#allocation7]  }
   0x9   :  { %s52_s20 = sshll.u32 %s385_s19, 4  ;;  %s53_s20 = int_to_ptr.vmem [resolvable:$true] %s52_s20 }
   0xa   :  { %58 = dma.hbm_to_vmem [thread:$0]  %s51_s4, 512, %s53_s20, [#allocation6], %s383_s15, %s383_s15, %s384_s16  }
   0xb   :  { %375 = dma.done.wait [#allocation3], 512  }
   0xc   :  { %376 = vsyncadd [#allocation3], 4294966784 }
   0xd   :  { %377 = dma.done.wait [#allocation6], 544  }
   0xe   :  { %378 = vsyncadd [#allocation6], 4294966752  ;;  %v89_v0 = vld [vmem:[#allocation2 + $0x18] sm:$0xff]  ;;  %v88_v2 = vld [vmem:[#allocation2 + $0x10] sm:$0xff]  ;;  %vm90_vm0 = vcmask 261120   ;;  %vm199_vm1 = vcmask 130048  }
   0xf   :  { %v84_v1 = vld [vmem:[%s493_s2 + $0x18] sm:$0xff]  ;;  %106 = vmatpush.msra.mxu0 %v89_v0  ;;  %v83_v3 = vld [vmem:[%s493_s2 + $0x10] sm:$0xff]  ;;  %v87_v4 = vld [vmem:[#allocation2 + $0x8] sm:$0xff]  ;;  %s386_s4 = smov [#allocation8]   ;;  %s251_s21 = sshll.u32 %s499_s8, 4  ;;  %s252_s21 = int_to_ptr.hbm [resolvable:$true] %s251_s21 }
  0x10   :  { %129 = vmatpush.msra.mxu1 %v84_v1  ;;  %v82_v5 = vld [vmem:[%s493_s2 + $0x8] sm:$0xff]  ;;  %v86_v6 = vld [vmem:[#allocation2] sm:$0xff]  ;;  %v142_v11 = vld [vmem:[#allocation7 + $0x10] sm:$0xff]  ;;  %s249_s19 = sshll.u32 %s386_s4, 4  ;;  %s250_s19 = int_to_ptr.vmem [resolvable:$true] %s249_s19 }
  0x11   :  { %107 = vmatpush.msra.mxu0 %v88_v2  ;;  %v81_v7 = vld [vmem:[%s493_s2] sm:$0xff]  ;;  %v141_v12 = vld [vmem:[#allocation7 + $0x8] sm:$0xff]  ;;  %v172_v14 = vld [vmem:[%s497_s6 + $0x18] sm:$0xff] }
  0x12   :  { %130 = vmatpush.msra.mxu1 %v83_v3  ;;  %v85_v8 = vld [vmem:[%s492_s1] sm:$0xff]  ;;  %189 = vmatpush.msra.mxu3 %v172_v14  ;;  %v171_v21 = vld [vmem:[%s497_s6 + $0x10] sm:$0xff]  ;;  %v170_v22 = vld [vmem:[%s497_s6 + $0x8] sm:$0xff] }
  0x13   :  { %108 = vmatpush.msra.mxu0 %v87_v4  ;;  %v80_v9 = vld [vmem:[%s491_s0] sm:$0xff] }
  0x14   :  { %131 = vmatpush.msra.mxu1 %v82_v5  ;;  %v143_v10 = vld [vmem:[#allocation7 + $0x18] sm:$0xff]  ;;  %v140_v13 = vld [vmem:[#allocation7] sm:$0xff]  ;;  %190 = vmatpush.msra.mxu3 %v171_v21 }
  0x15   :  { %109 = vmatpush.msra.mxu0 %v86_v6  ;;  %160 = vmatpush.msra.mxu2 %v143_v10  ;;  %v272_v15 = vld [vmem:[#allocation5] ss:$0 sm:$0xff]  ;;  %v273_v24 = vld [vmem:[#allocation5 + $0x1] ss:$0 sm:$0xff]  ;;  %v79_v60 = vld [vmem:[%s498_s7 + $0x2] sm:$0x1] }
  0x16   :  { %132 = vmatpush.msra.mxu1 %v81_v7  ;;  %262 = vmatmul.msk.f32.vlgmr.msra.gmra.mxu0 %vm90_vm0, %v85_v8  ;;  %v169_v23 = vld [vmem:[%s497_s6] sm:$0xff] }
  0x17   :  { %263 = vmatmul.msk.f32.vlgmr.msra.gmra.mxu1 %vm90_vm0, %v80_v9  ;;  %161 = vmatpush.msra.mxu2 %v142_v11  ;;  %v274_v28 = vld [vmem:[%s498_s7] ss:$0 sm:$0xff]  ;;  %v78_v56 = vld [vmem:[%s498_s7 + $0x1] sm:$0x1] }
  0x18   :  { %191 = vmatpush.msra.mxu3 %v170_v22 }
  0x19   :  { %162 = vmatpush.msra.mxu2 %v141_v12 }
  0x1a   :  { %192 = vmatpush.msra.mxu3 %v169_v23 }
  0x1b   :  { %163 = vmatpush.msra.mxu2 %v140_v13 }
  0x93   :  { %v111_v16 = vpop.f32.mrf.mxu0 }
  0x94   :  { %v134_v17 = vpop.f32.mrf.mxu1 }
  0x95   :  { %v135_v18 = vadd.f32 %v134_v17, %v111_v16 }
  0x97   :  { %v138_v19 = vadd.f32 %v272_v15, %v135_v18 }
  0x99   :  { %v139_v20 = vmax.f32 %v138_v19, 0.0 }
  0x9b   :  { %264 = vmatmul.msk.f32.vlgmr.msra.gmra.mxu2 %vm90_vm0, %v139_v20 }
 0x11e   :  { %v165_v25 = vpop.f32.mrf.mxu2 }
 0x11f   :  { %v166_v26 = vadd.f32 %v273_v24, %v165_v25 }
 0x121   :  { %v168_v27 = vmax.f32 %v166_v26, 0.0 }
 0x123   :  { %265 = vmatmul.msk.f32.vlgmr.msra.gmra.mxu3 %vm90_vm0, %v168_v27 }
 0x1a6   :  { %v194_v29 = vpop.f32.mrf.mxu3 }
 0x1a7   :  { %v195_v30 = vadd.f32 %v274_v28, %v194_v29 }
 0x1a9   :  { %200 = vst.msk [vmem:[#allocation8] sm:$0xff] %vm199_vm1, %v195_v30 }
 0x1b0   :  { %v205_v31 = vld [vmem:[#allocation8] sm:$0xff] }
 0x1b1   :  { %v206_v32 = vsel %vm199_vm1, %v205_v31, 0.0 }
 0x1b2   :  { %v207_v33 = vrot.slane %v206_v32, 4 }
 0x1b4   :  { %v208_v34 = vadd.f32 %v207_v33, %v206_v32 }
 0x1b6   :  { %v209_v35 = vrot.slane %v208_v34, 2 }
 0x1b8   :  { %v210_v36 = vadd.f32 %v209_v35, %v208_v34 }
 0x1ba   :  { %v211_v37 = vrot.slane %v210_v36, 1 }
 0x1bc   :  { %v212_v38 = vadd.f32 %v211_v37, %v210_v36 }
 0x1be   :  { %v213_v39 = vmul.f32 0.125, %v212_v38 }
 0x1c0   :  { %v214_v40 = vsub.f32 %v205_v31, %v213_v39 }
 0x1c2   :  { %v215_v41 = vmul.f32 %v214_v40, %v214_v40 }
 0x1c4   :  { %v216_v42 = vsel %vm199_vm1, %v215_v41, 0.0 }
 0x1c5   :  { %v217_v43 = vrot.slane %v216_v42, 4 }
 0x1c7   :  { %v218_v44 = vadd.f32 %v217_v43, %v216_v42 }
 0x1c9   :  { %v219_v45 = vrot.slane %v218_v44, 2 }
 0x1cb   :  { %v220_v46 = vadd.f32 %v219_v45, %v218_v44 }
 0x1cd   :  { %v221_v47 = vrot.slane %v220_v46, 1 }
 0x1cf   :  { %v222_v48 = vadd.f32 %v221_v47, %v220_v46 }
 0x1d1   :  { %v223_v49 = vmul.f32 0.125, %v222_v48 }
 0x1d3   :  { %v224_v50 = vadd.f32 1e-05, %v223_v49 }
 0x1d5   :  { %275 = vrsqrt.f32 %v224_v50  ;;  %vm231_vm3 = vweird.f32 %v224_v50 }
 0x1db   :  { %v276_v51 = vpop.eup %275 }
 0x1dc   :  { %v226_v52 = vmul.f32 %v276_v51, %v224_v50  ;;  %vm232_vm2 = vweird.f32 %v276_v51 }
 0x1dd   :  { %vm233_vm4 = vmor %vm231_vm3, %vm232_vm2 }
 0x1de   :  { %v227_v53 = vmul.f32 %v276_v51, %v226_v52 }
 0x1e0   :  { %v228_v54 = vmul.f32 0.5, %v227_v53 }
 0x1e2   :  { %v229_v55 = vsub.f32 1.5, %v228_v54 }
 0x1e4   :  { %v230_v57 = vmul.f32 %v276_v51, %v229_v55 }
 0x1e6   :  { %v234_v58 = vsel %vm233_vm4, %v276_v51, %v230_v57 }
 0x1e7   :  { %v235_v59 = vmul.f32 %v234_v58, %v78_v56 }
 0x1e9   :  { %v236_v61 = vmul.f32 %v235_v59, %v213_v39  ;;  %v238_v62 = vperm.slane %v235_v59, 0 }
 0x1eb   :  { %v237_v63 = vsub.f32 %v79_v60, %v236_v61  ;;  %v239_v0 = vmul.f32 %v238_v62, %v205_v31 }
 0x1ed   :  { %v240_v1 = vperm.slane %v237_v63, 0 }
 0x1ef   :  { %v241_v2 = vadd.f32 %v240_v1, %v239_v0 }
 0x1f1   :  { %277 = vtanh.f32 %v241_v2 }
 0x1f7   :  { %v278_v3 = vpop.eup %277 }
 0x1f8   :  { %243 = vst.msk [vmem:[#allocation8] sm:$0xff] %vm199_vm1, %v278_v3 }
 0x1f9   :  { %254 = dma.vmem_to_hbm [thread:$0]  %s250_s19, 128, %s252_s21, [#allocation4]  }
 0x1fa   :  { %379 = dma.done.wait [#allocation4], 128  }
 0x1fb   :  { %380 = vsyncadd [#allocation4], 4294967168 }
 0x1fc   :  { %259 = vsyncpa [#allocation3], 1 }
 0x1fd   :  { %260 = vsyncpa [#allocation6], 1 }
 0x1fe   :  { %261 = vsyncpa [#allocation4], 1 }

</bundles_post_ra>
